<compile_context>
chip_gen: v5e
topology: v5e:2x2
jax: 0.10.0
libtpu: 0.0.40
codegen_flags: <defaults>
</compile_context>

<pallas_src>
import functools

import jax
import jax.numpy as jnp
from jax.experimental import pallas as pl
from jax.experimental.pallas import tpu as pltpu


def dnn_kernel(x_ref, w1_ref, b1_ref, w2_ref, b2_ref, o_ref):
    # In-kernel f32 -> bf16 cast of the streamed x tile (VPU; hidden under DMA).
    x_bf = x_ref[...].astype(jnp.bfloat16)
    # Layer 1: Linear(128 -> 128-padded) + ReLU. bf16 operands, f32 accumulate (MXU).
    h = jnp.dot(x_bf, w1_ref[...], preferred_element_type=jnp.float32)
    h = jnp.maximum(h + b1_ref[...], 0.0)          # f32 epilogue, lane-full (128 wide)
    # Layer 2: Linear(128-padded -> 32) + ReLU. Cast h back to bf16 for the MXU push.
    o = jnp.dot(h.astype(w2_ref.dtype), w2_ref[...],
                preferred_element_type=jnp.float32)
    o = jnp.maximum(o + b2_ref[...], 0.0)
    # TODO(synk): training-mode dropout(p=0.7) omitted; eval-mode dropout is identity.
    # TODO(synk): 32-lane output store is masked (vst.msk); only near-critical on v7x
    #             with very large TB — left as-is to keep the f32 [B,32] output exact.
    o_ref[...] = o.astype(o_ref.dtype)


def prepare_params(w1, b1, w2, b2, *, hid_pad=128):
    """One-time parameter prep (hoisted out of the per-call path).

    Inputs are [in, out] weights (pre-transposed vs PyTorch's [out, in]) and [1, out]
    biases.  Pads the hidden dim to 128 lanes and casts weights to bf16.
    Padding is exact: ReLU(0)=0 and the padded W2 rows are zero.
    """
    hid = w1.shape[1]
    w1_p = jnp.pad(w1, ((0, 0), (0, hid_pad - hid))).astype(jnp.bfloat16)
    b1_p = jnp.pad(b1, ((0, 0), (0, hid_pad - hid))).astype(jnp.float32)
    w2_p = jnp.pad(w2, ((0, hid_pad - hid), (0, 0))).astype(jnp.bfloat16)
    b2_f = b2.astype(jnp.float32)
    return w1_p, b1_p, w2_p, b2_f


@functools.partial(jax.jit, static_argnames=("tb",))
def dnn_forward(x, w1_p, b1_p, w2_p, b2_f, *, tb=8192):
    """x: [B, 128] f32 -> [B, 32] f32.  Weights must come from prepare_params()."""
    B, in_dim = x.shape
    hid_pad = w1_p.shape[1]
    out_dim = w2_p.shape[1]

    # Batch tile: large enough to amortize ~0.35 us/step overhead and approach the
    # HBM roofline; at TB=8192 the double-buffered f32 x tile is 8 MiB and the f32
    # output 2 MiB — within every generation's default scoped VMEM (incl. v5e 16 MiB).
    # For small B use the whole batch as one block (block == full array dim is legal).
    TB = tb if B >= tb else B
    grid = (pl.cdiv(B, TB),)

    cost = pl.CostEstimate(
        flops=2 * B * (in_dim * hid_pad + hid_pad * out_dim),
        transcendentals=0,
        bytes_accessed=(B * in_dim * 4          # f32 x read
                        + B * out_dim * 4       # f32 out write
                        + w1_p.size * 2 + w2_p.size * 2
                        + b1_p.size * 4 + b2_f.size * 4),
    )

    return pl.pallas_call(
        dnn_kernel,
        out_shape=jax.ShapeDtypeStruct((B, out_dim), jnp.float32),
        grid_spec=pltpu.PrefetchScalarGridSpec(
            num_scalar_prefetch=0,
            grid=grid,
            in_specs=[
                pl.BlockSpec((TB, in_dim), lambda i: (i, 0)),       # x: f32, tiled on batch
                pl.BlockSpec(w1_p.shape, lambda i: (0, 0)),         # weights: VMEM-resident
                pl.BlockSpec(b1_p.shape, lambda i: (0, 0)),
                pl.BlockSpec(w2_p.shape, lambda i: (0, 0)),
                pl.BlockSpec(b2_f.shape, lambda i: (0, 0)),
            ],
            out_specs=pl.BlockSpec((TB, out_dim), lambda i: (i, 0)),
        ),
        compiler_params=pltpu.CompilerParams(
            # Batch tiles are independent -> parallel.
            # TODO(synk): verify cross-TC sharding on v7x; switch to CORE_PARALLEL /
            #             pl.core_map if "parallel" alone doesn't split across the 2 TCs.
            dimension_semantics=("parallel",),
        ),
        cost_estimate=cost,
    )(x, w1_p, b1_p, w2_p, b2_f)


def init_params(key, hidden_units):
    """Deterministic init mimicking nn.Linear default (uniform +-1/sqrt(fan_in)).
    Weights returned as [in, out] (transposed vs. PyTorch's [out, in])."""
    params = []
    for fan_in, fan_out in zip(hidden_units[:-1], hidden_units[1:]):
        key, kw, kb = jax.random.split(key, 3)
        bound = 1.0 / (fan_in ** 0.5)
        w = jax.random.uniform(kw, (fan_in, fan_out), jnp.float32, -bound, bound)
        b = jax.random.uniform(kb, (1, fan_out), jnp.float32, -bound, bound)
        params.append((w, b))
    return params


def _reference(x, w1, b1, w2, b2):
    """Pure-JAX reference with matching bf16-operand / f32-accumulate semantics."""
    xb = x.astype(jnp.bfloat16)
    h = jnp.maximum(
        jnp.dot(xb, w1.astype(jnp.bfloat16), preferred_element_type=jnp.float32) + b1, 0.0)
    return jnp.maximum(
        jnp.dot(h.astype(jnp.bfloat16), w2.astype(jnp.bfloat16),
                preferred_element_type=jnp.float32) + b2, 0.0)


if __name__ == "__main__":
    hidden_units = [128, 64, 32]

    key = jax.random.PRNGKey(0)
    key, kx = jax.random.split(key)

    (w1, b1), (w2, b2) = init_params(key, hidden_units)
    w1_p, b1_p, w2_p, b2_f = prepare_params(w1, b1, w2, b2)

    # --- small single-block case (B=8, grid of 1) ---
    batch = 8
    x = jax.random.normal(kx, (batch, hidden_units[0]), jnp.float32)
    out = jax.block_until_ready(dnn_forward(x, w1_p, b1_p, w2_p, b2_f))
    assert out.shape == (batch, hidden_units[-1])

    ref = _reference(x, w1, b1, w2, b2)
    assert jnp.allclose(out, ref, atol=1e-3, rtol=1e-3)

    # Sanity vs full-f32 reference (looser tolerance for bf16 operands).
    ref32 = jnp.maximum(jnp.maximum(x @ w1 + b1, 0.0) @ w2 + b2, 0.0)
    assert jnp.allclose(out, ref32, atol=5e-2, rtol=5e-2)

    # --- multi-step tiled path (B=64, tb=16 -> grid of 4) to exercise the pipeline ---
    key, kx2 = jax.random.split(key)
    x2 = jax.random.normal(kx2, (64, hidden_units[0]), jnp.float32)
    out2 = jax.block_until_ready(dnn_forward(x2, w1_p, b1_p, w2_p, b2_f, tb=16))
    assert out2.shape == (64, hidden_units[-1])
    assert jnp.allclose(out2, _reference(x2, w1, b1, w2, b2), atol=1e-3, rtol=1e-3)

    print("KERNEL_OK")
</pallas_src>

<mosaic_0001>
module attributes {stable_mosaic.version = 11 : i64} {
  func.func @dnn_kernel(%arg0: i32, %arg1: memref<8x128xf32, #tpu.memory_space<vmem>>, %arg2: memref<128x128xbf16, #tpu.memory_space<vmem>>, %arg3: memref<1x128xf32, #tpu.memory_space<vmem>>, %arg4: memref<128x32xbf16, #tpu.memory_space<vmem>>, %arg5: memref<1x32xf32, #tpu.memory_space<vmem>>, %arg6: memref<8x32xf32, #tpu.memory_space<vmem>>) attributes {dimension_semantics = [#tpu.dimension_semantics<parallel>], iteration_bounds = array<i64: 1>, scalar_prefetch = 0 : i64, scratch_operands = 0 : i64, tpu.core_type = #tpu.core_type<tc>, window_params = [{transform_indices = @transform_0, window_bounds = array<i64: 8, 128>}, {pipeline_mode = #tpu.pipeline_mode<synchronous>, transform_indices = @transform_1, window_bounds = array<i64: 128, 128>}, {pipeline_mode = #tpu.pipeline_mode<synchronous>, transform_indices = @transform_2, window_bounds = array<i64: 1, 128>}, {pipeline_mode = #tpu.pipeline_mode<synchronous>, transform_indices = @transform_3, window_bounds = array<i64: 128, 32>}, {pipeline_mode = #tpu.pipeline_mode<synchronous>, transform_indices = @transform_4, window_bounds = array<i64: 1, 32>}, {transform_indices = @transform_5, window_bounds = array<i64: 8, 32>}]} {
    %c0 = arith.constant 0 : index
    %c0_0 = arith.constant 0 : index
    %0 = vector.load %arg1[%c0, %c0_0] : memref<8x128xf32, #tpu.memory_space<vmem>>, vector<8x128xf32>
    %1 = arith.truncf %0 : vector<8x128xf32> to vector<8x128xbf16>
    %c0_1 = arith.constant 0 : index
    %c0_2 = arith.constant 0 : index
    %2 = vector.load %arg2[%c0_1, %c0_2] : memref<128x128xbf16, #tpu.memory_space<vmem>>, vector<128x128xbf16>
    %cst = arith.constant dense<0.000000e+00> : vector<8x128xf32>
    %3 = tpu.matmul %1, %2, %cst {dimension_numbers = #tpu.dot_dimension_numbers<[1], [0], [0], [1], [0, 0, 1, 1], [], []>} : vector<8x128xbf16>, vector<128x128xbf16>, vector<8x128xf32> -> vector<8x128xf32>
    %c0_3 = arith.constant 0 : index
    %c0_4 = arith.constant 0 : index
    %4 = vector.load %arg3[%c0_3, %c0_4] : memref<1x128xf32, #tpu.memory_space<vmem>>, vector<1x128xf32>
    %5 = vector.broadcast %4 : vector<1x128xf32> to vector<8x128xf32>
    %6 = arith.addf %3, %5 : vector<8x128xf32>
    %cst_5 = arith.constant 0.000000e+00 : f32
    %7 = vector.broadcast %cst_5 : f32 to vector<8x128xf32>
    %8 = arith.maximumf %6, %7 : vector<8x128xf32>
    %9 = arith.truncf %8 : vector<8x128xf32> to vector<8x128xbf16>
    %c0_6 = arith.constant 0 : index
    %c0_7 = arith.constant 0 : index
    %10 = vector.load %arg4[%c0_6, %c0_7] : memref<128x32xbf16, #tpu.memory_space<vmem>>, vector<128x32xbf16>
    %cst_8 = arith.constant dense<0.000000e+00> : vector<8x32xf32>
    %11 = tpu.matmul %9, %10, %cst_8 {dimension_numbers = #tpu.dot_dimension_numbers<[1], [0], [0], [1], [0, 0, 1, 1], [], []>} : vector<8x128xbf16>, vector<128x32xbf16>, vector<8x32xf32> -> vector<8x32xf32>
    %c0_9 = arith.constant 0 : index
    %c0_10 = arith.constant 0 : index
    %12 = vector.load %arg5[%c0_9, %c0_10] : memref<1x32xf32, #tpu.memory_space<vmem>>, vector<1x32xf32>
    %13 = vector.broadcast %12 : vector<1x32xf32> to vector<8x32xf32>
    %14 = arith.addf %11, %13 : vector<8x32xf32>
    %cst_11 = arith.constant 0.000000e+00 : f32
    %15 = vector.broadcast %cst_11 : f32 to vector<8x32xf32>
    %16 = arith.maximumf %14, %15 : vector<8x32xf32>
    %c0_12 = arith.constant 0 : index
    %c0_13 = arith.constant 0 : index
    %17 = vector.load %arg6[%c0_12, %c0_13] : memref<8x32xf32, #tpu.memory_space<vmem>>, vector<8x32xf32>
    tpu.vector_store %arg6[%c0_12, %c0_13], %16 {strides = array<i32>} : memref<8x32xf32, #tpu.memory_space<vmem>>, vector<8x32xf32>,
    return
  }
  func.func @transform_0(%arg0: i32) -> (i32, i32) {
    %c0_i32 = arith.constant 0 : i32
    %c0_i32_0 = arith.constant 0 : i32
    return %arg0, %c0_i32 : i32, i32
  }
  func.func @transform_1(%arg0: i32) -> (i32, i32) {
    %c0_i32 = arith.constant 0 : i32
    %c0_i32_0 = arith.constant 0 : i32
    %c0_i32_1 = arith.constant 0 : i32
    return %c0_i32, %c0_i32_0 : i32, i32
  }
  func.func @transform_2(%arg0: i32) -> (i32, i32) {
    %c0_i32 = arith.constant 0 : i32
    %c0_i32_0 = arith.constant 0 : i32
    %c0_i32_1 = arith.constant 0 : i32
    return %c0_i32, %c0_i32_0 : i32, i32
  }
  func.func @transform_3(%arg0: i32) -> (i32, i32) {
    %c0_i32 = arith.constant 0 : i32
    %c0_i32_0 = arith.constant 0 : i32
    %c0_i32_1 = arith.constant 0 : i32
    return %c0_i32, %c0_i32_0 : i32, i32
  }
  func.func @transform_4(%arg0: i32) -> (i32, i32) {
    %c0_i32 = arith.constant 0 : i32
    %c0_i32_0 = arith.constant 0 : i32
    %c0_i32_1 = arith.constant 0 : i32
    return %c0_i32, %c0_i32_0 : i32, i32
  }
  func.func @transform_5(%arg0: i32) -> (i32, i32) {
    %c0_i32 = arith.constant 0 : i32
    %c0_i32_0 = arith.constant 0 : i32
    return %arg0, %c0_i32 : i32, i32
  }
}

</mosaic_0001>

<bundles_post_ra>
// kernel: dnn_forward.1
= control target key start
LH: loop header
LB: loop body
LE: loop exit
PB: predicated region body
PF: predicated region fallthrough
CT: control target
= control target key end

     0   :  { %s406_s0 = inlined_call_operand.vmem [shape: f32[8,128], index: 0, kind: input, shape index: {}]   ;;  %s407_s1 = inlined_call_operand.vmem [shape: bf16[128,128], index: 1, kind: input, shape index: {}]   ;;  %s408_s2 = inlined_call_operand.vmem [shape: f32[1,128], index: 2, kind: input, shape index: {}]   ;;  %s409_s3 = inlined_call_operand.vmem [shape: bf16[128,32], index: 3, kind: input, shape index: {}]   ;;  %s410_s4 = inlined_call_operand.vmem [shape: f32[1,32], index: 4, kind: input, shape index: {}]   ;;  %s411_s5 = inlined_call_operand.hbm [shape: f32[8,32], index: 5, kind: output, shape index: {}]  }
   0x1   :  { %v277_v0 = vld [vmem:[%s407_s1 + $0x38] sm:$0xff]  ;;  %v276_v1 = vld [vmem:[%s407_s1 + $0x30] sm:$0xff]  ;;  %v275_v4 = vld [vmem:[%s407_s1 + $0x28] sm:$0xff] }
   0x2   :  { %91 = vmatpush.bf16.msra.mxu0 %v277_v0  ;;  %v285_v2 = vld [vmem:[%s409_s3 + $0x38] sm:$0xff]  ;;  %v284_v3 = vld [vmem:[%s409_s3 + $0x30] sm:$0xff] }
   0x3   :  { %174 = vmatpush.bf16.msra.mxu1 %v285_v2 }
   0x6   :  { %92 = vmatpush.bf16.msra.mxu0 %v276_v1 }
   0x7   :  { %10 = vsyncpa [#allocation3], 0  ;;  %175 = vmatpush.bf16.msra.mxu1 %v284_v3  ;;  %v283_v5 = vld [vmem:[%s409_s3 + $0x28] sm:$0xff]  ;;  %v274_v6 = vld [vmem:[%s407_s1 + $0x20] sm:$0xff]  ;;  %s315_s29 = smov [#allocation2]   ;;  %s197_s7 = sshll.u32 %s411_s5, 4  ;;  %s198_s7 = int_to_ptr.hbm [resolvable:$true] %s197_s7 }
   0x8   :  { %v282_v7 = vld [vmem:[%s409_s3 + $0x20] sm:$0xff]  ;;  %v273_v8 = vld [vmem:[%s407_s1 + $0x18] sm:$0xff]  ;;  %v272_v10 = vld [vmem:[%s407_s1 + $0x10] sm:$0xff]  ;;  %s195_s30 = sshll.u32 %s315_s29, 4  ;;  %vm188_vm0 = vcmask 261120   ;;  %s196_s30 = int_to_ptr.vmem [resolvable:$true] %s195_s30 }
   0x9   :  { %v281_v9 = vld [vmem:[%s409_s3 + $0x18] sm:$0xff]  ;;  %v280_v11 = vld [vmem:[%s409_s3 + $0x10] sm:$0xff]  ;;  %v271_v12 = vld [vmem:[%s407_s1 + $0x8] sm:$0xff] }
   0xa   :  { %93 = vmatpush.bf16.msra.mxu0 %v275_v4  ;;  %v270_v13 = vld [vmem:[%s407_s1] sm:$0xff]  ;;  %v279_v16 = vld [vmem:[%s409_s3 + $0x8] sm:$0xff] }
   0xb   :  { %176 = vmatpush.bf16.msra.mxu1 %v283_v5  ;;  %v21_v14 = vld [vmem:[%s406_s0] sm:$0xff] }
   0xc   :  { %v22_v15 = vpack.c.bf16 %v21_v14, %v21_v14  ;;  %v278_v17 = vld [vmem:[%s409_s3] sm:$0xff] }
   0xd   :  { %v287_v18 = vld [vmem:[%s408_s2] ss:$0 sm:$0xff] }
   0xe   :  { %94 = vmatpush.bf16.msra.mxu0 %v274_v6  ;;  %v288_v24 = vld [vmem:[%s410_s4] ss:$0 sm:$0xff] }
   0xf   :  { %177 = vmatpush.bf16.msra.mxu1 %v282_v7 }
  0x12   :  { %95 = vmatpush.bf16.msra.mxu0 %v273_v8 }
  0x13   :  { %178 = vmatpush.bf16.msra.mxu1 %v281_v9 }
  0x16   :  { %96 = vmatpush.bf16.msra.mxu0 %v272_v10 }
  0x17   :  { %179 = vmatpush.bf16.msra.mxu1 %v280_v11 }
  0x1a   :  { %97 = vmatpush.bf16.msra.mxu0 %v271_v12 }
  0x1b   :  { %180 = vmatpush.bf16.msra.mxu1 %v279_v16 }
  0x1e   :  { %98 = vmatpush.bf16.msra.mxu0 %v270_v13 }
  0x1f   :  { %181 = vmatpush.bf16.msra.mxu1 %v278_v17 }
  0x21   :  { %99 = vmatmul.bf16.vlgmr.msra.gmra.mxu0 %v22_v15 }
  0x9e   :  { %v100_v19 = vpop.f32.mrf.mxu0 }
  0x9f   :  { %v101_v20 = vadd.f32 %v287_v18, %v100_v19 }
  0xa1   :  { %v104_v21 = vmax.f32 %v101_v20, 0.0 }
  0xa3   :  { %v105_v22 = vpack.c.bf16 %v104_v21, %v104_v21 }
  0xa5   :  { %182 = vmatmul.bf16.vlgmr.msra.gmra.mxu1 %v105_v22 }
  0xa6   :  { %v102_v23 = vpop.f32.mrf.mxu0 }
 0x122   :  { %v183_v25 = vpop.f32.mrf.mxu1 }
 0x123   :  { %v184_v26 = vadd.f32 %v288_v24, %v183_v25 }
 0x125   :  { %v187_v27 = vmax.f32 %v184_v26, 0.0 }
 0x127   :  { %189 = vst.msk [vmem:[#allocation2] sm:$0xff] %vm188_vm0, %v187_v27 }
 0x128   :  { %200 = dma.vmem_to_hbm [thread:$0]  %s196_s30, 128, %s198_s7, [#allocation3]  }
 0x12a   :  { %v185_v28 = vpop.f32.mrf.mxu1 }
 0x12b   :  { %313 = dma.done.wait [#allocation3], 128  }
 0x12c   :  { %314 = vsyncadd [#allocation3], 4294967168 }
 0x12d   :  { %205 = vsyncpa [#allocation3], 1 }

</bundles_post_ra>
